<compile_context>
chip_gen: v7x
topology: tpu7x:2x2x1
jax: 0.10.0
libtpu: 0.0.40
codegen_flags: <defaults>
</compile_context>

<pallas_src>
import math
import numpy as np
import jax
import jax.numpy as jnp
from jax.experimental import pallas as pl
from jax.experimental.pallas import tpu as pltpu

# ----------------------------- problem sizes -----------------------------
B          = 8          # batch
HIDDEN     = 32         # hidden_dim
HEADS      = 4          # attend_heads
ATTEND_DIM = HIDDEN // HEADS
N_ELEM     = 3          # n_elements
OBS_DIM    = 16         # observation_space[j] (same for all j here)
ACT_DIM    = 8          # action_space[j]      (same for all j here)
IDIM       = OBS_DIM + ACT_DIM
STATE_DIM  = 16         # state_dim (state_agent features)
ODIM       = ACT_DIM    # action_dim  (meanfield features / q-output width)
ODIM2      = 8          # action_dim2 (meanfield2 features)
LANES      = 128        # lane width used for the packed parameter / activation slabs

# -------------------- packed parameter buffer layout ----------------------
# Every block is LANES wide; weight blocks get 128 rows (active region zero-padded),
# bias blocks get 8 rows (active row 0), the per-row encoder bias gets 2*B rows.
_P_BLOCKS = [
    ("w_enc", LANES),   # rows 0:2*IDIM, cols 0:H      : vstack(Wenc_1, Wenc_2)
    ("w_smm", LANES),   # rows 0:32,    cols 0:3H      : blockdiag(Ws, Wmf, Wmf2)
    ("w_sel", LANES),   # rows 0:H,     cols 0:H       : head-fused selector weights
    ("w_key", LANES),   # rows 0:H,     cols 0:H       : head-fused key weights
    ("w_val", LANES),   # rows 0:H,     cols 0:H       : head-fused value weights
    ("g_mat", LANES),   # rows 0:H,     cols 0:HEADS   : head-group sum indicator
    ("e_mat", LANES),   # rows 0:HEADS, cols 0:H       : head-lane broadcast indicator
    ("w_c1s", LANES),   # rows 0:3H,    cols 0:H       : wc1 rows for [s|mf|mf2] slab
    ("w_c1o", LANES),   # rows 0:H,     cols 0:H       : wc1 rows for attention values
    ("w_c2",  LANES),   # rows 0:H,     cols 0:ODIM    : wc2 (lane zero-padded)
    ("b_enc", 2 * B),   # per-row bias: rows 0:B = benc_1, rows B:2B = benc_2
    ("b_smm", 8),       # row 0, cols 0:3H = [bs|bmf|bmf2]
    ("b_val", 8),       # row 0, cols 0:H  = head-fused value bias
    ("b_c1",  8),       # row 0, cols 0:H
    ("b_c2",  8),       # row 0, cols 0:ODIM
]
P_LAYOUT = {}
_off = 0
for _name, _rows in _P_BLOCKS:
    P_LAYOUT[_name] = (_off, _off + _rows)
    _off += _rows
P_ROWS = _off


def _leaky(x):
    return jnp.where(x > 0, x, 0.01 * x)


# ------------------------------- kernel ----------------------------------
def mtmfaaql_kernel(act_ref, wp_ref, out_ref):
    def mm(x, w):
        return jnp.dot(x, w, preferred_element_type=jnp.float32)

    def blk(name):
        lo, hi = P_LAYOUT[name]
        return wp_ref[lo:hi, :]

    def bias(name):
        lo, _ = P_LAYOUT[name]
        return wp_ref[lo:lo + 1, :]

    sa  = act_ref[0:2 * B, :]        # (2B,128): rows 0:B=[obs+act elem1|0], B:2B=[0|obs+act elem2]
    smm = act_ref[2 * B:3 * B, :]    # (B,128):  [state_agent | meanfield | meanfield2 | 0]

    # fused encoders: 2 matmuls instead of 6 tiny ones (element 0's encoding is dead).
    enc12   = _leaky(mm(sa, blk("w_enc")) + blk("b_enc"))     # (2B,128) cols 0:H = sa_enc[1], sa_enc[2]
    smm_enc = _leaky(mm(smm, blk("w_smm")) + bias("b_smm"))   # (B,128)  cols 0:3H = [s_enc|mf_enc|mf2_enc]

    # head-fused attention projections (elements stacked on sublanes): 3 matmuls for all heads.
    sel  = mm(smm_enc, blk("w_sel"))                          # (B,128)  cols h*AD:(h+1)*AD = selector_h
    keys = mm(enc12, blk("w_key"))                            # (2B,128)
    vals = _leaky(mm(enc12, blk("w_val")) + bias("b_val"))    # (2B,128)
    k1, k2 = keys[0:B, :], keys[B:2 * B, :]
    v1, v2 = vals[0:B, :], vals[B:2 * B, :]

    # per-head logits via constant head-indicator matmuls (MXU) -- no XLU cross-lane reduces.
    scale = 1.0 / math.sqrt(ATTEND_DIM)
    l1 = mm(sel * k1, blk("g_mat")) * scale                   # (B,128) cols 0:HEADS = logits vs elem1
    l2 = mm(sel * k2, blk("g_mat")) * scale                   # (B,128) cols 0:HEADS = logits vs elem2
    # 2-element softmax, purely elementwise (padded lanes stay finite and are masked by e_mat).
    m   = jnp.maximum(l1, l2)
    e1  = jnp.exp(l1 - m)
    e2  = jnp.exp(l2 - m)
    inv = 1.0 / (e1 + e2)
    # broadcast head weights back to head lanes with a constant expansion matmul.
    w1 = mm(e1 * inv, blk("e_mat"))                           # (B,128) cols 0:H, per-head weight
    w2 = mm(e2 * inv, blk("e_mat"))
    other = v1 * w1 + v2 * w2                                 # (B,128) cols 0:H head-blocked values

    # critic: wc1 split so critic_in never needs a lane concatenate.
    hid = _leaky(mm(smm_enc, blk("w_c1s")) + mm(other, blk("w_c1o")) + bias("b_c1"))   # (B,128)
    out_ref[...] = (mm(hid, blk("w_c2")) + bias("b_c2")).astype(out_ref.dtype)         # (B,128) lane-dense


# --------------------------- parameter packing -----------------------------
def _place(wp, name, val, row_off=0, col_off=0):
    lo, _ = P_LAYOUT[name]
    r, c = val.shape
    return wp.at[lo + row_off:lo + row_off + r, col_off:col_off + c].set(val)


def pack_params(p):
    wp = jnp.zeros((P_ROWS, LANES), jnp.float32)

    # per-element encoders for elements 1..2, row-stacked to match the element-blocked input cols.
    wp = _place(wp, "w_enc", jnp.concatenate([p["wenc"][1], p["wenc"][2]], axis=0))
    wp = _place(wp, "b_enc", jnp.tile(p["benc"][1][None, :], (B, 1)))
    wp = _place(wp, "b_enc", jnp.tile(p["benc"][2][None, :], (B, 1)), row_off=B)

    # state / meanfield / meanfield2 encoders as a block-diagonal weight.
    wp = _place(wp, "w_smm", p["ws"])
    wp = _place(wp, "w_smm", p["wmf"],  row_off=STATE_DIM,        col_off=HIDDEN)
    wp = _place(wp, "w_smm", p["wmf2"], row_off=STATE_DIM + ODIM, col_off=2 * HIDDEN)
    wp = _place(wp, "b_smm", jnp.concatenate([p["bs"], p["bmf"], p["bmf2"]], axis=1))

    # head-fused attention projections: (HEADS, H, AD) -> (H, HEADS*AD).
    fuse = lambda w: jnp.transpose(w, (1, 0, 2)).reshape(HIDDEN, HEADS * ATTEND_DIM)
    wp = _place(wp, "w_sel", fuse(p["wsel"]))
    wp = _place(wp, "w_key", fuse(p["wk"]))
    wp = _place(wp, "w_val", fuse(p["wv"]))
    wp = _place(wp, "b_val", p["bv"].reshape(1, HEADS * ATTEND_DIM))

    # constant head-group sum / broadcast indicator matrices.
    head_id = jnp.arange(HEADS * ATTEND_DIM) // ATTEND_DIM
    g = (head_id[:, None] == jnp.arange(HEADS)[None, :]).astype(jnp.float32)   # (H, HEADS)
    wp = _place(wp, "g_mat", g)
    wp = _place(wp, "e_mat", g.T)

    # critic head.
    wp = _place(wp, "w_c1s", p["wc1"][:3 * HIDDEN])
    wp = _place(wp, "w_c1o", p["wc1"][3 * HIDDEN:])
    wp = _place(wp, "b_c1", p["bc1"])
    wp = _place(wp, "w_c2", p["wc2"])
    wp = _place(wp, "b_c2", p["bc2"])
    return wp


# ------------------------------- wrapper ----------------------------------
def pack_activations(sa_in, state_agent, meanfield, meanfield2):
    act = jnp.zeros((3 * B, LANES), jnp.float32)
    act = act.at[0:B, 0:IDIM].set(sa_in[1])                                   # element 1, col-block 0
    act = act.at[B:2 * B, IDIM:2 * IDIM].set(sa_in[2])                        # element 2, col-block 1
    act = act.at[2 * B:3 * B, 0:STATE_DIM].set(state_agent)
    act = act.at[2 * B:3 * B, STATE_DIM:STATE_DIM + ODIM].set(meanfield)
    act = act.at[2 * B:3 * B, STATE_DIM + ODIM:STATE_DIM + ODIM + ODIM2].set(meanfield2)
    return act


@jax.jit
def mtmfaaql_forward(sa_in, state_agent, meanfield, meanfield2, wp):
    act = pack_activations(sa_in, state_agent, meanfield, meanfield2)
    vmem = pltpu.MemorySpace.VMEM
    out = pl.pallas_call(
        mtmfaaql_kernel,
        out_shape=jax.ShapeDtypeStruct((B, LANES), jnp.float32),
        in_specs=[pl.BlockSpec(memory_space=vmem), pl.BlockSpec(memory_space=vmem)],
        out_specs=pl.BlockSpec(memory_space=vmem),
    )(act, wp)
    return out[:, :ODIM]     # lane-dense store in the kernel, slice to action_dim here


# --------------------------- pure-JAX reference ----------------------------
def mtmfaaql_reference(sa_in, state_agent, meanfield, meanfield2, p):
    sa_enc = [_leaky(sa_in[j] @ p["wenc"][j] + p["benc"][j]) for j in range(N_ELEM)]
    s_enc = _leaky(state_agent @ p["ws"] + p["bs"][0])
    mf_enc = _leaky(meanfield @ p["wmf"] + p["bmf"][0])
    mf2_enc = _leaky(meanfield2 @ p["wmf2"] + p["bmf2"][0])
    other = []
    for h in range(HEADS):
        sel = s_enc @ p["wsel"][h]
        keys = jnp.stack([sa_enc[j] @ p["wk"][h] for j in range(1, N_ELEM)], axis=2)
        vals = jnp.stack([_leaky(sa_enc[j] @ p["wv"][h] + p["bv"][h])
                          for j in range(1, N_ELEM)], axis=2)
        logits = jnp.einsum('bd,bdn->bn', sel, keys) / math.sqrt(ATTEND_DIM)
        w = jax.nn.softmax(logits, axis=1)
        other.append(jnp.einsum('bdn,bn->bd', vals, w))
    critic_in = jnp.concatenate([s_enc, mf_enc, mf2_enc] + other, axis=1)
    hid = _leaky(critic_in @ p["wc1"] + p["bc1"][0])
    return hid @ p["wc2"] + p["bc2"][0]


# ------------------------------- params / main -----------------------------
def init_params(key):
    ks = jax.random.split(key, 20)
    n = lambda k, shape, s=0.1: (jax.random.normal(k, shape, jnp.float32) * s)
    return {
        "wenc": n(ks[0], (N_ELEM, IDIM, HIDDEN)),
        "benc": n(ks[1], (N_ELEM, HIDDEN)),
        "ws":   n(ks[2], (STATE_DIM, HIDDEN)),
        "bs":   n(ks[3], (1, HIDDEN)),
        "wmf":  n(ks[4], (ODIM, HIDDEN)),
        "bmf":  n(ks[5], (1, HIDDEN)),
        "wmf2": n(ks[6], (ODIM2, HIDDEN)),
        "bmf2": n(ks[7], (1, HIDDEN)),
        "wk":   n(ks[8], (HEADS, HIDDEN, ATTEND_DIM)),
        "wsel": n(ks[9], (HEADS, HIDDEN, ATTEND_DIM)),
        "wv":   n(ks[10], (HEADS, HIDDEN, ATTEND_DIM)),
        "bv":   n(ks[11], (HEADS, ATTEND_DIM)),
        "wc1":  n(ks[12], (4 * HIDDEN, HIDDEN)),
        "bc1":  n(ks[13], (1, HIDDEN)),
        "wc2":  n(ks[14], (HIDDEN, ODIM)),
        "bc2":  n(ks[15], (1, ODIM)),
    }


if __name__ == "__main__":
    key = jax.random.PRNGKey(0)
    kp, k1, k2, k3, k4 = jax.random.split(key, 5)
    params = init_params(kp)
    wp = pack_params(params)          # one-time: pack all 16 parameter tensors into one slab

    # inps: per-element (obs, act) pairs -> stacked & concatenated to (N_ELEM, B, IDIM)
    sa_in       = jax.random.normal(k1, (N_ELEM, B, IDIM), jnp.float32)
    state_agent = jax.random.normal(k2, (B, STATE_DIM), jnp.float32)
    meanfield   = jax.random.normal(k3, (B, ODIM), jnp.float32)
    meanfield2  = jax.random.normal(k4, (B, ODIM2), jnp.float32)

    all_q = mtmfaaql_forward(sa_in, state_agent, meanfield, meanfield2, wp)
    jax.block_until_ready(all_q)

    ref = mtmfaaql_reference(sa_in, state_agent, meanfield, meanfield2, params)
    np.testing.assert_allclose(np.asarray(all_q), np.asarray(ref), rtol=1e-4, atol=1e-5)

    # TODO(synk): regularize / return_attend / head-entropy logging branches are
    # host-side diagnostics and are not materialized in the kernel.
    print("KERNEL_OK")
</pallas_src>

<mosaic_0001>
module attributes {stable_mosaic.version = 11 : i64} {
  func.func @mtmfaaql_kernel(%arg0: memref<24x128xf32, #tpu.memory_space<vmem>>, %arg1: memref<1328x128xf32, #tpu.memory_space<vmem>>, %arg2: memref<8x128xf32, #tpu.memory_space<vmem>>) attributes {dimension_semantics = [], scalar_prefetch = 0 : i64, scratch_operands = 0 : i64, tpu.core_type = #tpu.core_type<tc>} {
    %c0 = arith.constant 0 : index
    %c0_0 = arith.constant 0 : index
    %0 = vector.load %arg0[%c0, %c0_0] : memref<24x128xf32, #tpu.memory_space<vmem>>, vector<16x128xf32>
    %c16 = arith.constant 16 : index
    %c0_1 = arith.constant 0 : index
    %1 = vector.load %arg0[%c16, %c0_1] : memref<24x128xf32, #tpu.memory_space<vmem>>, vector<8x128xf32>
    %c0_2 = arith.constant 0 : index
    %c0_3 = arith.constant 0 : index
    %2 = vector.load %arg1[%c0_2, %c0_3] : memref<1328x128xf32, #tpu.memory_space<vmem>>, vector<128x128xf32>
    %cst = arith.constant dense<0.000000e+00> : vector<16x128xf32>
    %3 = tpu.matmul %0, %2, %cst {dimension_numbers = #tpu.dot_dimension_numbers<[1], [0], [0], [1], [0, 0, 1, 1], [], []>} : vector<16x128xf32>, vector<128x128xf32>, vector<16x128xf32> -> vector<16x128xf32>
    %c1280 = arith.constant 1280 : index
    %c0_4 = arith.constant 0 : index
    %4 = vector.load %arg1[%c1280, %c0_4] : memref<1328x128xf32, #tpu.memory_space<vmem>>, vector<16x128xf32>
    %5 = arith.addf %3, %4 : vector<16x128xf32>
    %cst_5 = arith.constant 0.000000e+00 : f32
    %6 = vector.broadcast %cst_5 : f32 to vector<16x128xf32>
    %7 = arith.cmpf ogt, %5, %6 : vector<16x128xf32>
    %cst_6 = arith.constant 0.00999999977 : f32
    %8 = vector.broadcast %cst_6 : f32 to vector<16x128xf32>
    %9 = arith.mulf %8, %5 : vector<16x128xf32>
    %10 = arith.select %7, %5, %9 : vector<16x128xi1>, vector<16x128xf32>
    %c128 = arith.constant 128 : index
    %c0_7 = arith.constant 0 : index
    %11 = vector.load %arg1[%c128, %c0_7] : memref<1328x128xf32, #tpu.memory_space<vmem>>, vector<128x128xf32>
    %cst_8 = arith.constant dense<0.000000e+00> : vector<8x128xf32>
    %12 = tpu.matmul %1, %11, %cst_8 {dimension_numbers = #tpu.dot_dimension_numbers<[1], [0], [0], [1], [0, 0, 1, 1], [], []>} : vector<8x128xf32>, vector<128x128xf32>, vector<8x128xf32> -> vector<8x128xf32>
    %c1296 = arith.constant 1296 : index
    %c0_9 = arith.constant 0 : index
    %13 = vector.load %arg1[%c1296, %c0_9] : memref<1328x128xf32, #tpu.memory_space<vmem>>, vector<1x128xf32>
    %14 = vector.broadcast %13 : vector<1x128xf32> to vector<8x128xf32>
    %15 = arith.addf %12, %14 : vector<8x128xf32>
    %cst_10 = arith.constant 0.000000e+00 : f32
    %16 = vector.broadcast %cst_10 : f32 to vector<8x128xf32>
    %17 = arith.cmpf ogt, %15, %16 : vector<8x128xf32>
    %cst_11 = arith.constant 0.00999999977 : f32
    %18 = vector.broadcast %cst_11 : f32 to vector<8x128xf32>
    %19 = arith.mulf %18, %15 : vector<8x128xf32>
    %20 = arith.select %17, %15, %19 : vector<8x128xi1>, vector<8x128xf32>
    %c256 = arith.constant 256 : index
    %c0_12 = arith.constant 0 : index
    %21 = vector.load %arg1[%c256, %c0_12] : memref<1328x128xf32, #tpu.memory_space<vmem>>, vector<128x128xf32>
    %cst_13 = arith.constant dense<0.000000e+00> : vector<8x128xf32>
    %22 = tpu.matmul %20, %21, %cst_13 {dimension_numbers = #tpu.dot_dimension_numbers<[1], [0], [0], [1], [0, 0, 1, 1], [], []>} : vector<8x128xf32>, vector<128x128xf32>, vector<8x128xf32> -> vector<8x128xf32>
    %c384 = arith.constant 384 : index
    %c0_14 = arith.constant 0 : index
    %23 = vector.load %arg1[%c384, %c0_14] : memref<1328x128xf32, #tpu.memory_space<vmem>>, vector<128x128xf32>
    %cst_15 = arith.constant dense<0.000000e+00> : vector<16x128xf32>
    %24 = tpu.matmul %10, %23, %cst_15 {dimension_numbers = #tpu.dot_dimension_numbers<[1], [0], [0], [1], [0, 0, 1, 1], [], []>} : vector<16x128xf32>, vector<128x128xf32>, vector<16x128xf32> -> vector<16x128xf32>
    %c512 = arith.constant 512 : index
    %c0_16 = arith.constant 0 : index
    %25 = vector.load %arg1[%c512, %c0_16] : memref<1328x128xf32, #tpu.memory_space<vmem>>, vector<128x128xf32>
    %cst_17 = arith.constant dense<0.000000e+00> : vector<16x128xf32>
    %26 = tpu.matmul %10, %25, %cst_17 {dimension_numbers = #tpu.dot_dimension_numbers<[1], [0], [0], [1], [0, 0, 1, 1], [], []>} : vector<16x128xf32>, vector<128x128xf32>, vector<16x128xf32> -> vector<16x128xf32>
    %c1304 = arith.constant 1304 : index
    %c0_18 = arith.constant 0 : index
    %27 = vector.load %arg1[%c1304, %c0_18] : memref<1328x128xf32, #tpu.memory_space<vmem>>, vector<1x128xf32>
    %28 = vector.broadcast %27 : vector<1x128xf32> to vector<16x128xf32>
    %29 = arith.addf %26, %28 : vector<16x128xf32>
    %cst_19 = arith.constant 0.000000e+00 : f32
    %30 = vector.broadcast %cst_19 : f32 to vector<16x128xf32>
    %31 = arith.cmpf ogt, %29, %30 : vector<16x128xf32>
    %cst_20 = arith.constant 0.00999999977 : f32
    %32 = vector.broadcast %cst_20 : f32 to vector<16x128xf32>
    %33 = arith.mulf %32, %29 : vector<16x128xf32>
    %34 = arith.select %31, %29, %33 : vector<16x128xi1>, vector<16x128xf32>
    %35 = vector.extract_strided_slice %24 {offsets = [0, 0], sizes = [8, 128], strides = [1, 1]} : vector<16x128xf32> to vector<8x128xf32>
    %36 = vector.extract_strided_slice %24 {offsets = [8, 0], sizes = [8, 128], strides = [1, 1]} : vector<16x128xf32> to vector<8x128xf32>
    %37 = vector.extract_strided_slice %34 {offsets = [0, 0], sizes = [8, 128], strides = [1, 1]} : vector<16x128xf32> to vector<8x128xf32>
    %38 = vector.extract_strided_slice %34 {offsets = [8, 0], sizes = [8, 128], strides = [1, 1]} : vector<16x128xf32> to vector<8x128xf32>
    %39 = arith.mulf %22, %35 : vector<8x128xf32>
    %c640 = arith.constant 640 : index
    %c0_21 = arith.constant 0 : index
    %40 = vector.load %arg1[%c640, %c0_21] : memref<1328x128xf32, #tpu.memory_space<vmem>>, vector<128x128xf32>
    %cst_22 = arith.constant dense<0.000000e+00> : vector<8x128xf32>
    %41 = tpu.matmul %39, %40, %cst_22 {dimension_numbers = #tpu.dot_dimension_numbers<[1], [0], [0], [1], [0, 0, 1, 1], [], []>} : vector<8x128xf32>, vector<128x128xf32>, vector<8x128xf32> -> vector<8x128xf32>
    %cst_23 = arith.constant 0.353553385 : f32
    %42 = vector.broadcast %cst_23 : f32 to vector<8x128xf32>
    %43 = arith.mulf %41, %42 : vector<8x128xf32>
    %44 = arith.mulf %22, %36 : vector<8x128xf32>
    %c640_24 = arith.constant 640 : index
    %c0_25 = arith.constant 0 : index
    %45 = vector.load %arg1[%c640_24, %c0_25] : memref<1328x128xf32, #tpu.memory_space<vmem>>, vector<128x128xf32>
    %cst_26 = arith.constant dense<0.000000e+00> : vector<8x128xf32>
    %46 = tpu.matmul %44, %45, %cst_26 {dimension_numbers = #tpu.dot_dimension_numbers<[1], [0], [0], [1], [0, 0, 1, 1], [], []>} : vector<8x128xf32>, vector<128x128xf32>, vector<8x128xf32> -> vector<8x128xf32>
    %cst_27 = arith.constant 0.353553385 : f32
    %47 = vector.broadcast %cst_27 : f32 to vector<8x128xf32>
    %48 = arith.mulf %46, %47 : vector<8x128xf32>
    %49 = arith.maximumf %43, %48 : vector<8x128xf32>
    %50 = arith.subf %43, %49 : vector<8x128xf32>
    %51 = math.exp %50 : vector<8x128xf32>
    %52 = arith.subf %48, %49 : vector<8x128xf32>
    %53 = math.exp %52 : vector<8x128xf32>
    %54 = arith.addf %51, %53 : vector<8x128xf32>
    %cst_28 = arith.constant 1.000000e+00 : f32
    %55 = vector.broadcast %cst_28 : f32 to vector<8x128xf32>
    %56 = arith.divf %55, %54 : vector<8x128xf32>
    %57 = arith.mulf %51, %56 : vector<8x128xf32>
    %c768 = arith.constant 768 : index
    %c0_29 = arith.constant 0 : index
    %58 = vector.load %arg1[%c768, %c0_29] : memref<1328x128xf32, #tpu.memory_space<vmem>>, vector<128x128xf32>
    %cst_30 = arith.constant dense<0.000000e+00> : vector<8x128xf32>
    %59 = tpu.matmul %57, %58, %cst_30 {dimension_numbers = #tpu.dot_dimension_numbers<[1], [0], [0], [1], [0, 0, 1, 1], [], []>} : vector<8x128xf32>, vector<128x128xf32>, vector<8x128xf32> -> vector<8x128xf32>
    %60 = arith.mulf %53, %56 : vector<8x128xf32>
    %c768_31 = arith.constant 768 : index
    %c0_32 = arith.constant 0 : index
    %61 = vector.load %arg1[%c768_31, %c0_32] : memref<1328x128xf32, #tpu.memory_space<vmem>>, vector<128x128xf32>
    %cst_33 = arith.constant dense<0.000000e+00> : vector<8x128xf32>
    %62 = tpu.matmul %60, %61, %cst_33 {dimension_numbers = #tpu.dot_dimension_numbers<[1], [0], [0], [1], [0, 0, 1, 1], [], []>} : vector<8x128xf32>, vector<128x128xf32>, vector<8x128xf32> -> vector<8x128xf32>
    %63 = arith.mulf %37, %59 : vector<8x128xf32>
    %64 = arith.mulf %38, %62 : vector<8x128xf32>
    %65 = arith.addf %63, %64 : vector<8x128xf32>
    %c896 = arith.constant 896 : index
    %c0_34 = arith.constant 0 : index
    %66 = vector.load %arg1[%c896, %c0_34] : memref<1328x128xf32, #tpu.memory_space<vmem>>, vector<128x128xf32>
    %cst_35 = arith.constant dense<0.000000e+00> : vector<8x128xf32>
    %67 = tpu.matmul %20, %66, %cst_35 {dimension_numbers = #tpu.dot_dimension_numbers<[1], [0], [0], [1], [0, 0, 1, 1], [], []>} : vector<8x128xf32>, vector<128x128xf32>, vector<8x128xf32> -> vector<8x128xf32>
    %c1024 = arith.constant 1024 : index
    %c0_36 = arith.constant 0 : index
    %68 = vector.load %arg1[%c1024, %c0_36] : memref<1328x128xf32, #tpu.memory_space<vmem>>, vector<128x128xf32>
    %cst_37 = arith.constant dense<0.000000e+00> : vector<8x128xf32>
    %69 = tpu.matmul %65, %68, %cst_37 {dimension_numbers = #tpu.dot_dimension_numbers<[1], [0], [0], [1], [0, 0, 1, 1], [], []>} : vector<8x128xf32>, vector<128x128xf32>, vector<8x128xf32> -> vector<8x128xf32>
    %70 = arith.addf %67, %69 : vector<8x128xf32>
    %c1312 = arith.constant 1312 : index
    %c0_38 = arith.constant 0 : index
    %71 = vector.load %arg1[%c1312, %c0_38] : memref<1328x128xf32, #tpu.memory_space<vmem>>, vector<1x128xf32>
    %72 = vector.broadcast %71 : vector<1x128xf32> to vector<8x128xf32>
    %73 = arith.addf %70, %72 : vector<8x128xf32>
    %cst_39 = arith.constant 0.000000e+00 : f32
    %74 = vector.broadcast %cst_39 : f32 to vector<8x128xf32>
    %75 = arith.cmpf ogt, %73, %74 : vector<8x128xf32>
    %cst_40 = arith.constant 0.00999999977 : f32
    %76 = vector.broadcast %cst_40 : f32 to vector<8x128xf32>
    %77 = arith.mulf %76, %73 : vector<8x128xf32>
    %78 = arith.select %75, %73, %77 : vector<8x128xi1>, vector<8x128xf32>
    %c1152 = arith.constant 1152 : index
    %c0_41 = arith.constant 0 : index
    %79 = vector.load %arg1[%c1152, %c0_41] : memref<1328x128xf32, #tpu.memory_space<vmem>>, vector<128x128xf32>
    %cst_42 = arith.constant dense<0.000000e+00> : vector<8x128xf32>
    %80 = tpu.matmul %78, %79, %cst_42 {dimension_numbers = #tpu.dot_dimension_numbers<[1], [0], [0], [1], [0, 0, 1, 1], [], []>} : vector<8x128xf32>, vector<128x128xf32>, vector<8x128xf32> -> vector<8x128xf32>
    %c1320 = arith.constant 1320 : index
    %c0_43 = arith.constant 0 : index
    %81 = vector.load %arg1[%c1320, %c0_43] : memref<1328x128xf32, #tpu.memory_space<vmem>>, vector<1x128xf32>
    %82 = vector.broadcast %81 : vector<1x128xf32> to vector<8x128xf32>
    %83 = arith.addf %80, %82 : vector<8x128xf32>
    %c0_44 = arith.constant 0 : index
    %c0_45 = arith.constant 0 : index
    %84 = vector.load %arg2[%c0_44, %c0_45] : memref<8x128xf32, #tpu.memory_space<vmem>>, vector<8x128xf32>
    tpu.vector_store %arg2[%c0_44, %c0_45], %83 {strides = array<i32>} : memref<8x128xf32, #tpu.memory_space<vmem>>, vector<8x128xf32>,
    return
  }
}

</mosaic_0001>

<bundles_post_ra>
// kernel: mtmfaaql_forward.1
= control target key start
LH: loop header
LB: loop body
LE: loop exit
PB: predicated region body
PF: predicated region fallthrough
CT: control target
= control target key end

     0   :  { %7 = vsyncpa [#allocation3], 0  ;;  %s2287_s0 = inlined_call_operand.vmem [shape: f32[24,128], index: 0, kind: input, shape index: {}]   ;;  %s2288_s1 = inlined_call_operand.hbm [shape: f32[1328,128], index: 1, kind: input, shape index: {}]   ;;  %s2289_s2 = inlined_call_operand.hbm [shape: f32[8,128], index: 2, kind: output, shape index: {}]  }
   0x1   :  { %8 = vsyncpa [#allocation4], 0  ;;  %s2124_s9 = smov [#allocation2]   ;;  %s2076_s13 = scalar_lea.hbm %s2288_s1, 21248 }
   0x2   :  { %s16_s10 = sshll.u32 %s2124_s9, 4  ;;  %p2077_p0 = scmp.ne.s32.totalorder %s2288_s1, %s2076_s13  ;;  %s17_s10 = int_to_ptr.vmem [resolvable:$true] %s16_s10 }
   0x3   :  { %p2080_p1 = scmp.lt.u32.totalorder %s2076_s13, %s2288_s1 }
   0x5   :  { %p2082_p2 = pnand %p2080_p1, %p2077_p0 }
   0x7   :  { %2085 = shalt.err (!%p2082_p2)
}
   0x8   :  { %s2086_s18 = scalar_lea.vmem %s17_s10, 21248  ;;  %p2091_p4 = scmp.lt.s32.totalorder %s17_s10, %s17_s10 }
   0x9   :  { %p2087_p3 = scmp.ne.s32.totalorder %s17_s10, %s2086_s18  ;;  %p2092_p5 = scmp.lt.s32.totalorder %s2086_s18, %s2086_s18 }
   0xb   :  { %p2093_p6 = por %p2092_p5, %p2091_p4 }
   0xd   :  { %p2094_p7 = pnand %p2093_p6, %p2087_p3 }
   0xf   :  { %2097 = shalt.err (!%p2094_p7)
}
  0x10   :  { %s2125_s19 = smov 128   ;;  %s2126_s20 = smov 8  }
  0x11   :  { %22 = dma.hbm_to_vmem [thread:$0]  %s2288_s1, 21248, %s17_s10, [#allocation3], %s2125_s19, %s2125_s19, %s2126_s20  }
  0x12   :  { %2120 = dma.done.wait [#allocation3], 21248  }
  0x13   :  { %2121 = vsyncadd [#allocation3], 4294946048  ;;  %v2127_v0 = vmov 0.0|0.0   ;;  %vm2128_vm0 = vmmov 0   ;;  %v2129_v1 = vmov 0.0   ;;  %v29_v2 = vld [vmem:[#allocation2] sm:$0xff] }
  0x14   :  { %1783 = vmatprep.subr.bf16.mxu1 %v2127_v0  ;;  %1398 = vmatprep.mubr.msk.f32.mxu1 %vm2128_vm0, %v2129_v1  ;;  %v30_v3 = vld [vmem:[#allocation2 + $0x8] sm:$0xff]  ;;  %v128_v4 = vld [vmem:[#allocation2 + $0x80] sm:$0xff]  ;;  %v31_v7 = vld [vmem:[#allocation2 + $0x10] sm:$0xff] }
  0x15   :  { %v1751_v5 = vpack.c.bf16 %v30_v3, %v29_v2  ;;  %v129_v6 = vld [vmem:[#allocation2 + $0x88] sm:$0xff]  ;;  %v32_v8 = vld [vmem:[#allocation2 + $0x18] sm:$0xff]  ;;  %v130_v11 = vld [vmem:[#allocation2 + $0x90] sm:$0xff] }
  0x16   :  { %v1784_v9 = vpack.c.bf16 %v129_v6, %v128_v4  ;;  %v1755_v10 = vpack.c.bf16 %v32_v8, %v31_v7  ;;  %v131_v12 = vld [vmem:[#allocation2 + $0x98] sm:$0xff]  ;;  %v33_v13 = vld [vmem:[#allocation2 + $0x20] sm:$0xff]  ;;  %v34_v14 = vld [vmem:[#allocation2 + $0x28] sm:$0xff] }
  0x17   :  { %1752 = vmatprep.subr.bf16.mxu0 %v1751_v5  ;;  %v1787_v15 = vpack.c.bf16 %v131_v12, %v130_v11  ;;  %v1759_v16 = vpack.c.bf16 %v34_v14, %v33_v13  ;;  %v132_v17 = vld [vmem:[#allocation2 + $0xa0] sm:$0xff]  ;;  %v133_v18 = vld [vmem:[#allocation2 + $0xa8] sm:$0xff]  ;;  %v35_v19 = vld [vmem:[#allocation2 + $0x30] sm:$0xff] }
  0x18   :  { %1785 = vmatpush3.bf16.msra.mxu1 %v1784_v9  ;;  %1754 = vmatpush3.bf16.msra.mxu0 %v1751_v5  ;;  %v36_v20 = vld [vmem:[#allocation2 + $0x38] sm:$0xff]  ;;  %v1790_v21 = vpack.c.bf16 %v133_v18, %v132_v17  ;;  %v134_v23 = vld [vmem:[#allocation2 + $0xb0] sm:$0xff]  ;;  %v37_v25 = vld [vmem:[#allocation2 + $0x40] sm:$0xff] }
  0x19   :  { %1786 = vmatprep.subr.bf16.mxu1 %v2127_v0  ;;  %1756 = vmatprep.subr.bf16.mxu0 %v1755_v10  ;;  %v1763_v22 = vpack.c.bf16 %v36_v20, %v35_v19  ;;  %v135_v24 = vld [vmem:[#allocation2 + $0xb8] sm:$0xff]  ;;  %v38_v26 = vld [vmem:[#allocation2 + $0x48] sm:$0xff]  ;;  %v26_v27 = vld [vmem:[%s2287_s0] sm:$0xff] }
  0x1a   :  { %1363 = vmatprep.mubr.f32.mxu0 %v26_v27  ;;  %v1793_v28 = vpack.c.bf16 %v135_v24, %v134_v23  ;;  %v1767_v29 = vpack.c.bf16 %v38_v26, %v37_v25  ;;  %v136_v30 = vld [vmem:[#allocation2 + $0xc0] sm:$0xff]  ;;  %v137_v31 = vld [vmem:[#allocation2 + $0xc8] sm:$0xff]  ;;  %v39_v32 = vld [vmem:[#allocation2 + $0x50] sm:$0xff] }
  0x1b   :  { %v40_v33 = vld [vmem:[#allocation2 + $0x58] sm:$0xff]  ;;  %v1796_v34 = vpack.c.bf16 %v137_v31, %v136_v30  ;;  %v138_v36 = vld [vmem:[#allocation2 + $0xd0] sm:$0xff]  ;;  %v41_v38 = vld [vmem:[#allocation2 + $0x60] sm:$0xff] }
  0x1c   :  { %1788 = vmatpush3.bf16.msra.mxu1 %v1787_v15  ;;  %1758 = vmatpush3.bf16.msra.mxu0 %v1755_v10  ;;  %v1771_v35 = vpack.c.bf16 %v40_v33, %v39_v32  ;;  %v139_v37 = vld [vmem:[#allocation2 + $0xd8] sm:$0xff]  ;;  %v42_v39 = vld [vmem:[#allocation2 + $0x68] sm:$0xff]  ;;  %v140_v42 = vld [vmem:[#allocation2 + $0xe0] sm:$0xff] }
  0x1d   :  { %1789 = vmatprep.subr.bf16.mxu1 %v2127_v0  ;;  %1760 = vmatprep.subr.bf16.mxu0 %v1759_v16  ;;  %v1799_v40 = vpack.c.bf16 %v139_v37, %v138_v36  ;;  %v1775_v41 = vpack.c.bf16 %v42_v39, %v41_v38  ;;  %v141_v43 = vld [vmem:[#allocation2 + $0xe8] sm:$0xff]  ;;  %v43_v44 = vld [vmem:[#allocation2 + $0x70] sm:$0xff]  ;;  %v44_v45 = vld [vmem:[#allocation2 + $0x78] sm:$0xff] }
  0x1e   :  { %v1802_v46 = vpack.c.bf16 %v141_v43, %v140_v42  ;;  %v1779_v47 = vpack.c.bf16 %v44_v45, %v43_v44  ;;  %v142_v48 = vld [vmem:[#allocation2 + $0xf0] sm:$0xff]  ;;  %v143_v49 = vld [vmem:[#allocation2 + $0xf8] sm:$0xff]  ;;  %v308_v50 = vld [vmem:[#allocation2 + $0x180] sm:$0xff] }
  0x1f   :  { %v309_v51 = vld [vmem:[#allocation2 + $0x188] sm:$0xff]  ;;  %v1805_v52 = vpack.c.bf16 %v143_v49, %v142_v48  ;;  %v222_v53 = vld [vmem:[#allocation2 + $0x100] sm:$0xff]  ;;  %v310_v56 = vld [vmem:[#allocation2 + $0x190] sm:$0xff] }
  0x20   :  { %1791 = vmatpush3.bf16.msra.mxu1 %v1790_v21  ;;  %1762 = vmatpush3.bf16.msra.mxu0 %v1759_v16  ;;  %v223_v54 = vld [vmem:[#allocation2 + $0x108] sm:$0xff]  ;;  %v1831_v55 = vpack.c.bf16 %v309_v51, %v308_v50  ;;  %v311_v57 = vld [vmem:[#allocation2 + $0x198] sm:$0xff]  ;;  %v28_v58 = vld [vmem:[%s2287_s0 + $0x10] sm:$0xff] }
  0x21   :  { %1792 = vmatprep.subr.bf16.mxu1 %v2127_v0  ;;  %1764 = vmatprep.subr.bf16.mxu0 %v1763_v22  ;;  %v27_v59 = vld [vmem:[%s2287_s0 + $0x8] sm:$0xff]  ;;  %v1808_v60 = vpack.c.bf16 %v223_v54, %v222_v53  ;;  %v224_v61 = vld [vmem:[#allocation2 + $0x110] sm:$0xff]  ;;  %v225_v62 = vld [vmem:[#allocation2 + $0x118] sm:$0xff]  ;;  %v1835_v63 = vpack.c.bf16 %v311_v57, %v310_v56  ;;  %s2130_s0 = smov [#allocation5]  }
  0x22   :  { %v312_v2 = vld [vmem:[#allocation2 + $0x1a0] sm:$0xff]  ;;  %v313_v3 = vld [vmem:[#allocation2 + $0x1a8] sm:$0xff]  ;;  %v1811_v4 = vpack.c.bf16 %v225_v62, %v224_v61  ;;  %v314_v8 = vld [vmem:[#allocation2 + $0x1b0] sm:$0xff]  ;;  %s1111_s28 = sshll.u32 %s2130_s0, 4  ;;  %s1112_s28 = int_to_ptr.vmem [resolvable:$true] %s1111_s28 }
  0x23   :  { %v226_v5 = vld [vmem:[#allocation2 + $0x120] sm:$0xff]  ;;  %v227_v6 = vld [vmem:[#allocation2 + $0x128] sm:$0xff]  ;;  %v1839_v7 = vpack.c.bf16 %v313_v3, %v312_v2  ;;  %v315_v9 = vld [vmem:[#allocation2 + $0x1b8] sm:$0xff]  ;;  %s2098_s29 = scalar_lea.vmem %s1112_s28, 128  ;;  %p2103_p9 = scmp.lt.s32.totalorder %s1112_s28, %s1112_s28 }
  0x24   :  { %1794 = vmatpush3.bf16.msra.mxu1 %v1793_v28  ;;  %1766 = vmatpush3.bf16.msra.mxu0 %v1763_v22  ;;  %v1814_v10 = vpack.c.bf16 %v227_v6, %v226_v5  ;;  %v228_v11 = vld [vmem:[#allocation2 + $0x130] sm:$0xff]  ;;  %v229_v12 = vld [vmem:[#allocation2 + $0x138] sm:$0xff]  ;;  %v1843_v13 = vpack.c.bf16 %v315_v9, %v314_v8  ;;  %v316_v14 = vld [vmem:[#allocation2 + $0x1c0] sm:$0xff]  ;;  %p2099_p8 = scmp.ne.s32.totalorder %s1112_s28, %s2098_s29  ;;  %p2104_p10 = scmp.lt.s32.totalorder %s2098_s29, %s2098_s29 }
  0x25   :  { %1795 = vmatprep.subr.bf16.mxu1 %v2127_v0  ;;  %1768 = vmatprep.subr.bf16.mxu0 %v1767_v29  ;;  %v317_v15 = vld [vmem:[#allocation2 + $0x1c8] sm:$0xff]  ;;  %v1817_v16 = vpack.c.bf16 %v229_v12, %v228_v11  ;;  %v230_v17 = vld [vmem:[#allocation2 + $0x140] sm:$0xff]  ;;  %v318_v20 = vld [vmem:[#allocation2 + $0x1d0] sm:$0xff] }
  0x26   :  { %v231_v18 = vld [vmem:[#allocation2 + $0x148] sm:$0xff]  ;;  %v1847_v19 = vpack.c.bf16 %v317_v15, %v316_v14  ;;  %v319_v21 = vld [vmem:[#allocation2 + $0x1d8] sm:$0xff]  ;;  %v232_v23 = vld [vmem:[#allocation2 + $0x150] sm:$0xff]  ;;  %p2105_p11 = por %p2104_p10, %p2103_p9 }
  0x27   :  { %v1820_v22 = vpack.c.bf16 %v231_v18, %v230_v17  ;;  %v233_v24 = vld [vmem:[#allocation2 + $0x158] sm:$0xff]  ;;  %v1851_v25 = vpack.c.bf16 %v319_v21, %v318_v20  ;;  %v234_v27 = vld [vmem:[#allocation2 + $0x160] sm:$0xff]  ;;  %v235_v28 = vld [vmem:[#allocation2 + $0x168] sm:$0xff] }
  0x28   :  { %1797 = vmatpush3.bf16.msra.mxu1 %v1796_v34  ;;  %1770 = vmatpush3.bf16.msra.mxu0 %v1767_v29  ;;  %v1823_v26 = vpack.c.bf16 %v233_v24, %v232_v23  ;;  %v1826_v29 = vpack.c.bf16 %v235_v28, %v234_v27  ;;  %v320_v30 = vld [vmem:[#allocation2 + $0x1e0] sm:$0xff]  ;;  %v321_v31 = vld [vmem:[#allocation2 + $0x1e8] sm:$0xff]  ;;  %v236_v33 = vld [vmem:[#allocation2 + $0x170] sm:$0xff]  ;;  %p2106_p12 = pnand %p2105_p11, %p2099_p8 }
  0x29   :  { %1798 = vmatprep.subr.bf16.mxu1 %v2127_v0  ;;  %1772 = vmatprep.subr.bf16.mxu0 %v1771_v35  ;;  %v1855_v32 = vpack.c.bf16 %v321_v31, %v320_v30  ;;  %v237_v34 = vld [vmem:[#allocation2 + $0x178] sm:$0xff]  ;;  %v322_v36 = vld [vmem:[#allocation2 + $0x1f0] sm:$0xff]  ;;  %v399_v39 = vld [vmem:[#allocation2 + $0x200] sm:$0xff] }
  0x2a   :  { %v323_v37 = vld [vmem:[#allocation2 + $0x1f8] sm:$0xff]  ;;  %v1120_v42 = vld [vmem:[#allocation2 + $0x510] ss:$0 sm:$0xff]  ;;  %v46_v43 = vld [vmem:[#allocation2 + $0x508] sm:$0xff] }
  0x2b   :  { %v1859_v38 = vpack.c.bf16 %v323_v37, %v322_v36  ;;  %v45_v44 = vld [vmem:[#allocation2 + $0x500] sm:$0xff]  ;;  %v401_v51 = vld [vmem:[#allocation2 + $0x210] sm:$0xff]  ;;  %v402_v53 = vld [vmem:[#allocation2 + $0x218] sm:$0xff] }
  0x2c   :  { %1800 = vmatpush3.bf16.msra.mxu1 %v1799_v40  ;;  %1774 = vmatpush3.bf16.msra.mxu0 %v1771_v35  ;;  %v1829_v35 = vpack.c.bf16 %v237_v34, %v236_v33  ;;  %v400_v40 = vld [vmem:[#allocation2 + $0x208] sm:$0xff]  ;;  %v502_v54 = vld [vmem:[#allocation2 + $0x280] sm:$0xff]  ;;  %v504_v3 = vld [vmem:[#allocation2 + $0x290] sm:$0xff] }
  0x2d   :  { %1801 = vmatprep.subr.bf16.mxu1 %v2127_v0  ;;  %1776 = vmatprep.subr.bf16.mxu0 %v1775_v41  ;;  %v403_v61 = vld [vmem:[#allocation2 + $0x220] sm:$0xff]  ;;  %v404_v62 = vld [vmem:[#allocation2 + $0x228] sm:$0xff]  ;;  %v406_v8 = vld [vmem:[#allocation2 + $0x238] sm:$0xff] }
  0x2e   :  { %v1871_v6 = vpack.c.bf16 %v404_v62, %v403_v61  ;;  %v507_v11 = vld [vmem:[#allocation2 + $0x2a8] sm:$0xff]  ;;  %v509_v17 = vld [vmem:[#allocation2 + $0x2b8] sm:$0xff]  ;;  %v512_v28 = vld [vmem:[#allocation2 + $0x2d0] sm:$0xff] }
  0x2f   :  { %v408_v14 = vld [vmem:[#allocation2 + $0x248] sm:$0xff]  ;;  %v410_v20 = vld [vmem:[#allocation2 + $0x258] sm:$0xff]  ;;  %v413_v31 = vld [vmem:[#allocation2 + $0x270] sm:$0xff] }
  0x30   :  { %1803 = vmatpush3.bf16.msra.mxu1 %v1802_v46  ;;  %1778 = vmatpush3.bf16.msra.mxu0 %v1775_v41  ;;  %v1863_v41 = vpack.c.bf16 %v400_v40, %v399_v39  ;;  %v511_v23 = vld [vmem:[#allocation2 + $0x2c8] sm:$0xff]  ;;  %v514_v34 = vld [vmem:[#allocation2 + $0x2e0] sm:$0xff]  ;;  %v517_v39 = vld [vmem:[#allocation2 + $0x2f8] sm:$0xff] }
  0x31   :  { %1804 = vmatprep.subr.bf16.mxu1 %v2127_v0  ;;  %1780 = vmatprep.subr.bf16.mxu0 %v1779_v47  ;;  %v680_v62 = vld [vmem:[#allocation2 + $0x340] sm:$0xff] }
  0x34   :  { %1806 = vmatpush3.bf16.msra.mxu1 %v1805_v52  ;;  %1782 = vmatpush3.bf16.msra.mxu0 %v1779_v47 }
  0x35   :  { %1807 = vmatprep.subr.bf16.mxu0 %v2127_v0  ;;  %1832 = vmatprep.subr.bf16.mxu1 %v1831_v55 }
  0x37   :  { %1399 = vmatmul.mubr.f32.vlgmr.msra.gmra.mrb[0].mxu1 %v28_v58  ;;  %1364 = vmatmul.mubr.f32.vlgmr.msra.gmra.mrb[0].mxu0 %v27_v59 }
  0x38   :  { %1809 = vmatpush3.bf16.msra.mxu0 %v1808_v60  ;;  %1834 = vmatpush3.bf16.msra.mxu1 %v1831_v55  ;;  %v503_v55 = vld [vmem:[#allocation2 + $0x288] sm:$0xff]  ;;  %v1867_v60 = vpack.c.bf16 %v402_v53, %v401_v51  ;;  %v675_v53 = vld [vmem:[#allocation2 + $0x318] sm:$0xff] }
  0x39   :  { %1810 = vmatprep.subr.bf16.mxu0 %v2127_v0  ;;  %1836 = vmatprep.subr.bf16.mxu1 %v1835_v63 }
  0x3a   :  { %1433 = vmatprep.mubr.msk.f32.mxu0 %vm2128_vm0, %v2129_v1 }
  0x3c   :  { %1812 = vmatpush3.bf16.msra.mxu0 %v1811_v4  ;;  %1838 = vmatpush3.bf16.msra.mxu1 %v1835_v63  ;;  %v2190_v63 = vpack.c.bf16 %v503_v55, %v502_v54  ;;  %v505_v4 = vld [vmem:[#allocation2 + $0x298] sm:$0xff]  ;;  %v676_v55 = vld [vmem:[#allocation2 + $0x320] sm:$0xff] }
  0x3d   :  { %1813 = vmatprep.subr.bf16.mxu0 %v2127_v0  ;;  %1840 = vmatprep.subr.bf16.mxu1 %v1839_v7  ;;  %v1899_v9 = vpack.c.bf16 %v505_v4, %v504_v3  ;;  %v682_v3 = vld [vmem:[#allocation2 + $0x350] sm:$0xff]  ;;  %v683_v4 = vld [vmem:[#allocation2 + $0x358] sm:$0xff] }
  0x40   :  { %1815 = vmatpush3.bf16.msra.mxu0 %v1814_v10  ;;  %1842 = vmatpush3.bf16.msra.mxu1 %v1839_v7  ;;  %v405_v7 = vld [vmem:[#allocation2 + $0x230] sm:$0xff]  ;;  %v506_v10 = vld [vmem:[#allocation2 + $0x2a0] sm:$0xff] }
  0x41   :  { %1816 = vmatprep.subr.bf16.mxu0 %v2127_v0  ;;  %1844 = vmatprep.subr.bf16.mxu1 %v1843_v13  ;;  %v1875_v12 = vpack.c.bf16 %v406_v8, %v405_v7  ;;  %v1902_v15 = vpack.c.bf16 %v507_v11, %v506_v10  ;;  %v685_v7 = vld [vmem:[#allocation2 + $0x368] sm:$0xff]  ;;  %v687_v10 = vld [vmem:[#allocation2 + $0x378] sm:$0xff] }
  0x44   :  { %1818 = vmatpush3.bf16.msra.mxu0 %v1817_v16  ;;  %1846 = vmatpush3.bf16.msra.mxu1 %v1843_v13  ;;  %v407_v13 = vld [vmem:[#allocation2 + $0x240] sm:$0xff]  ;;  %v508_v16 = vld [vmem:[#allocation2 + $0x2b0] sm:$0xff] }
  0x45   :  { %1819 = vmatprep.subr.bf16.mxu0 %v2127_v0  ;;  %1848 = vmatprep.subr.bf16.mxu1 %v1847_v19  ;;  %v1879_v18 = vpack.c.bf16 %v408_v14, %v407_v13  ;;  %v1905_v21 = vpack.c.bf16 %v509_v17, %v508_v16 }
  0x48   :  { %1821 = vmatpush3.bf16.msra.mxu0 %v1820_v22  ;;  %1850 = vmatpush3.bf16.msra.mxu1 %v1847_v19  ;;  %v409_v19 = vld [vmem:[#allocation2 + $0x250] sm:$0xff]  ;;  %v510_v22 = vld [vmem:[#allocation2 + $0x2c0] sm:$0xff] }
  0x49   :  { %1822 = vmatprep.subr.bf16.mxu0 %v2127_v0  ;;  %1852 = vmatprep.subr.bf16.mxu1 %v1851_v25  ;;  %v1883_v24 = vpack.c.bf16 %v410_v20, %v409_v19  ;;  %v1908_v27 = vpack.c.bf16 %v511_v23, %v510_v22 }
  0x4c   :  { %1824 = vmatpush3.bf16.msra.mxu0 %v1823_v26  ;;  %1854 = vmatpush3.bf16.msra.mxu1 %v1851_v25  ;;  %v411_v25 = vld [vmem:[#allocation2 + $0x260] sm:$0xff]  ;;  %v412_v26 = vld [vmem:[#allocation2 + $0x268] sm:$0xff] }
  0x4d   :  { %1825 = vmatprep.subr.bf16.mxu0 %v2127_v0  ;;  %1856 = vmatprep.subr.bf16.mxu1 %v1855_v32  ;;  %v1887_v30 = vpack.c.bf16 %v412_v26, %v411_v25  ;;  %v832_v26 = vld [vmem:[#allocation2 + $0x380] sm:$0xff] }
  0x50   :  { %1827 = vmatpush3.bf16.msra.mxu0 %v1826_v29  ;;  %1858 = vmatpush3.bf16.msra.mxu1 %v1855_v32  ;;  %v513_v29 = vld [vmem:[#allocation2 + $0x2d8] sm:$0xff] }
  0x51   :  { %1828 = vmatprep.subr.bf16.mxu0 %v2127_v0  ;;  %1860 = vmatprep.subr.bf16.mxu1 %v1859_v38  ;;  %v414_v32 = vld [vmem:[#allocation2 + $0x278] sm:$0xff]  ;;  %v1911_v33 = vpack.c.bf16 %v513_v29, %v512_v28  ;;  %v848_v28 = vld [vmem:[#allocation2 + $0x400] sm:$0xff]  ;;  %v849_v29 = vld [vmem:[#allocation2 + $0x408] sm:$0xff] }
  0x52   :  { %v1891_v36 = vpack.c.bf16 %v414_v32, %v413_v31 }
  0x54   :  { %1830 = vmatpush3.bf16.msra.mxu0 %v1829_v35  ;;  %1862 = vmatpush3.bf16.msra.mxu1 %v1859_v38  ;;  %v515_v35 = vld [vmem:[#allocation2 + $0x2e8] sm:$0xff]  ;;  %v516_v38 = vld [vmem:[#allocation2 + $0x2f0] sm:$0xff] }
  0x55   :  { %1864 = vmatprep.subr.bf16.mxu0 %v1863_v41  ;;  %1895 = vmatprep.subr.bf16.mxu1 %v2127_v0  ;;  %v1914_v37 = vpack.c.bf16 %v515_v35, %v514_v34  ;;  %v1917_v40 = vpack.c.bf16 %v517_v39, %v516_v38  ;;  %v834_v34 = vld [vmem:[#allocation2 + $0x390] sm:$0xff]  ;;  %v835_v35 = vld [vmem:[#allocation2 + $0x398] sm:$0xff] }
  0x56   :  { %v851_v38 = vld [vmem:[#allocation2 + $0x418] sm:$0xff]  ;;  %v2019_v39 = vpack.c.bf16 %v835_v35, %v834_v34  ;;  %v1015_v34 = vld [vmem:[#allocation2 + $0x490] sm:$0xff]  ;;  %v1017_v35 = vld [vmem:[#allocation2 + $0x4a0] sm:$0xff] }
 0x10a   :  { %v215_v45 = vpop.f32.mrb[0].mxu1  ;;  %v1365_v46 = vpop.f32.mrb[0].mxu0 }
 0x10b   :  { %v216_v47 = vadd.f32 %v1120_v42, %v215_v45  ;;  %v119_v48 = vadd.f32 %v1365_v46, %v46_v43  ;;  %v113_v49 = vpop.f32.mrb[1].mxu0  ;;  %v1400_v50 = vpop.f32.mrb[1].mxu1 }
 0x10c   :  { %v114_v52 = vadd.f32 %v113_v49, %v45_v44  ;;  %v672_v49 = vld [vmem:[#allocation2 + $0x300] sm:$0xff]  ;;  %v673_v50 = vld [vmem:[#allocation2 + $0x308] sm:$0xff] }
 0x10d   :  { %vm219_vm1 = vcmp.gt.f32.partialorder %v216_v47, 0.0  ;;  %v220_v56 = vmul.f32 0.01, %v216_v47  ;;  %v125_v57 = vmul.f32 0.01, %v119_v48  ;;  %vm123_vm2 = vcmp.gt.f32.partialorder %v119_v48, 0.0 }
 0x10e   :  { %v124_v58 = vmul.f32 0.01, %v114_v52  ;;  %vm122_vm3 = vcmp.gt.f32.partialorder %v114_v52, 0.0  ;;  %v1944_v51 = vpack.c.bf16 %v673_v50, %v672_v49  ;;  %v839_v49 = vld [vmem:[#allocation2 + $0x3b8] sm:$0xff] }
 0x10f   :  { %v2188_v59 = vsel %vm219_vm1, %v216_v47, %v220_v56  ;;  %v2193_v5 = vsel %vm123_vm2, %v119_v48, %v125_v57  ;;  %v677_v56 = vld [vmem:[#allocation2 + $0x328] sm:$0xff] }
 0x110   :  { %1434 = vmatmul.mubr.f32.vlgmr.msra.gmra.mrb[2].mxu0 %v2188_v59  ;;  %v126_v2 = vsel %vm122_vm3, %v114_v52, %v124_v58  ;;  %v674_v52 = vld [vmem:[#allocation2 + $0x310] sm:$0xff]  ;;  %v1950_v57 = vpack.c.bf16 %v677_v56, %v676_v55  ;;  %v841_v55 = vld [vmem:[#allocation2 + $0x3c8] sm:$0xff] }
 0x111   :  { %1866 = vmatpush3.bf16.msra.mxu0 %v1863_v41  ;;  %1468 = vmatprep.mubr.f32.mxu1 %v126_v2  ;;  %v1947_v54 = vpack.c.bf16 %v675_v53, %v674_v52  ;;  %v678_v58 = vld [vmem:[#allocation2 + $0x330] sm:$0xff]  ;;  %v855_v52 = vld [vmem:[#allocation2 + $0x438] sm:$0xff] }
 0x112   :  { %1503 = vmatprep.mubr.f32.mxu0 %v126_v2  ;;  %1469 = vmatmul.mubr.f32.vlgmr.msra.gmra.mrb[2].mxu1 %v2193_v5 }
 0x113   :  { %1868 = vmatprep.subr.bf16.mxu0 %v1867_v60  ;;  %1897 = vmatpush3.bf16.msra.mxu1 %v2190_v63 }
 0x114   :  { %1898 = vmatprep.subr.bf16.mxu1 %v2127_v0  ;;  %1538 = vmatprep.mubr.msk.f32.mxu1 %vm2128_vm0, %v2129_v1 }
 0x115   :  { %1870 = vmatpush3.bf16.msra.mxu0 %v1867_v60  ;;  %v679_v60 = vld [vmem:[#allocation2 + $0x338] sm:$0xff] }
 0x116   :  { %1872 = vmatprep.subr.bf16.mxu0 %v1871_v6  ;;  %v1953_v61 = vpack.c.bf16 %v679_v60, %v678_v58  ;;  %v857_v58 = vld [vmem:[#allocation2 + $0x448] sm:$0xff] }
 0x117   :  { %1900 = vmatpush3.bf16.msra.mxu1 %v1899_v9 }
 0x118   :  { %1901 = vmatprep.subr.bf16.mxu1 %v2127_v0 }
 0x119   :  { %1874 = vmatpush3.bf16.msra.mxu0 %v1871_v6  ;;  %v684_v6 = vld [vmem:[#allocation2 + $0x360] sm:$0xff] }
 0x11a   :  { %1876 = vmatprep.subr.bf16.mxu0 %v1875_v12  ;;  %v1962_v8 = vpack.c.bf16 %v685_v7, %v684_v6  ;;  %v845_v6 = vld [vmem:[#allocation2 + $0x3e8] sm:$0xff] }
 0x11b   :  { %1903 = vmatpush3.bf16.msra.mxu1 %v1902_v15 }
 0x11c   :  { %1904 = vmatprep.subr.bf16.mxu1 %v2127_v0 }
 0x11d   :  { %1878 = vmatpush3.bf16.msra.mxu0 %v1875_v12 }
 0x11e   :  { %1880 = vmatprep.subr.bf16.mxu0 %v1879_v18 }
 0x11f   :  { %1906 = vmatpush3.bf16.msra.mxu1 %v1905_v21 }
 0x120   :  { %1907 = vmatprep.subr.bf16.mxu1 %v2127_v0 }
 0x121   :  { %1882 = vmatpush3.bf16.msra.mxu0 %v1879_v18 }
 0x122   :  { %1884 = vmatprep.subr.bf16.mxu0 %v1883_v24 }
 0x123   :  { %1909 = vmatpush3.bf16.msra.mxu1 %v1908_v27 }
 0x124   :  { %1910 = vmatprep.subr.bf16.mxu1 %v2127_v0 }
 0x125   :  { %1886 = vmatpush3.bf16.msra.mxu0 %v1883_v24 }
 0x126   :  { %1888 = vmatprep.subr.bf16.mxu0 %v1887_v30 }
 0x127   :  { %1912 = vmatpush3.bf16.msra.mxu1 %v1911_v33 }
 0x128   :  { %1913 = vmatprep.subr.bf16.mxu1 %v2127_v0 }
 0x129   :  { %1890 = vmatpush3.bf16.msra.mxu0 %v1887_v30 }
 0x12a   :  { %1892 = vmatprep.subr.bf16.mxu0 %v1891_v36 }
 0x12b   :  { %1915 = vmatpush3.bf16.msra.mxu1 %v1914_v37 }
 0x12c   :  { %1916 = vmatprep.subr.bf16.mxu1 %v2127_v0 }
 0x12d   :  { %1894 = vmatpush3.bf16.msra.mxu0 %v1891_v36  ;;  %v1992_v36 = vpack.c.bf16 %v849_v29, %v848_v28 }
 0x12e   :  { %1919 = vmatprep.subr.bf16.mxu0 %v2127_v0 }
 0x12f   :  { %1918 = vmatpush3.bf16.msra.mxu1 %v1917_v40 }
 0x130   :  { %1504 = vmatmul.mubr.f32.vlgmr.msra.gmra.mrb[4].mxu0 %v2193_v5  ;;  %1943 = vmatprep.subr.bf16.mxu1 %v2127_v0  ;;  %v1959_v5 = vpack.c.bf16 %v683_v4, %v682_v3  ;;  %v859_v3 = vld [vmem:[#allocation2 + $0x458] sm:$0xff] }
 0x131   :  { %1921 = vmatpush3.bf16.msra.mxu0 %v2190_v63  ;;  %1573 = vmatprep.mubr.msk.f32.mxu0 %vm2128_vm0, %v2129_v1  ;;  %v681_v63 = vld [vmem:[#allocation2 + $0x348] sm:$0xff] }
 0x132   :  { %1922 = vmatprep.subr.bf16.mxu0 %v2127_v0  ;;  %v1956_v2 = vpack.c.bf16 %v681_v63, %v680_v62  ;;  %v843_v62 = vld [vmem:[#allocation2 + $0x3d8] sm:$0xff] }
 0x135   :  { %1924 = vmatpush3.bf16.msra.mxu0 %v1899_v9  ;;  %v686_v9 = vld [vmem:[#allocation2 + $0x370] sm:$0xff] }
 0x136   :  { %1925 = vmatprep.subr.bf16.mxu0 %v2127_v0  ;;  %v1965_v11 = vpack.c.bf16 %v687_v10, %v686_v9  ;;  %v861_v9 = vld [vmem:[#allocation2 + $0x468] sm:$0xff] }
 0x139   :  { %1927 = vmatpush3.bf16.msra.mxu0 %v1902_v15 }
 0x13a   :  { %1928 = vmatprep.subr.bf16.mxu0 %v2127_v0 }
 0x13d   :  { %1930 = vmatpush3.bf16.msra.mxu0 %v1905_v21 }
 0x13e   :  { %1931 = vmatprep.subr.bf16.mxu0 %v2127_v0 }
 0x141   :  { %1933 = vmatpush3.bf16.msra.mxu0 %v1908_v27  ;;  %v833_v27 = vld [vmem:[#allocation2 + $0x388] sm:$0xff] }
 0x142   :  { %1934 = vmatprep.subr.bf16.mxu0 %v2127_v0  ;;  %v2016_v31 = vpack.c.bf16 %v833_v27, %v832_v26 }
 0x145   :  { %1936 = vmatpush3.bf16.msra.mxu0 %v1911_v33 }
 0x146   :  { %1937 = vmatprep.subr.bf16.mxu0 %v2127_v0 }
 0x149   :  { %1939 = vmatpush3.bf16.msra.mxu0 %v1914_v37  ;;  %v850_v37 = vld [vmem:[#allocation2 + $0x410] sm:$0xff] }
 0x14a   :  { %1940 = vmatprep.subr.bf16.mxu0 %v2127_v0 }
 0x14d   :  { %1942 = vmatpush3.bf16.msra.mxu0 %v1917_v40  ;;  %v836_v40 = vld [vmem:[#allocation2 + $0x3a0] sm:$0xff] }
 0x14e   :  { %1967 = vmatprep.subr.bf16.mxu0 %v2127_v0 }
 0x1e3   :  { %v304_v41 = vpop.f32.mrb[2].mxu0 }
 0x1e4   :  { %v1435_v42 = vpop.f32.mrb[3].mxu0 }
 0x1e5   :  { %v1470_v43 = vpop.f32.mrb[2].mxu1  ;;  %v1995_v42 = vpack.c.bf16 %v851_v38, %v850_v37  ;;  %v1019_v38 = vld [vmem:[#allocation2 + $0x4b0] sm:$0xff] }
 0x1e6   :  { %v589_v44 = vmul.f32 %v1470_v43, %v304_v41  ;;  %v390_v45 = vpop.f32.mrb[3].mxu1  ;;  %v852_v43 = vld [vmem:[#allocation2 + $0x420] sm:$0xff] }
 0x1e7   :  { %v501_v46 = vmul.f32 %v390_v45, %v304_v41  ;;  %v837_v41 = vld [vmem:[#allocation2 + $0x3a8] sm:$0xff] }
 0x1e8   :  { %1574 = vmatmul.mubr.f32.vlgmr.msra.gmra.mrb[6].mxu0 %v589_v44  ;;  %v853_v44 = vld [vmem:[#allocation2 + $0x428] sm:$0xff]  ;;  %v2022_v45 = vpack.c.bf16 %v837_v41, %v836_v40  ;;  %v1021_v41 = vld [vmem:[#allocation2 + $0x4c0] sm:$0xff] }
 0x1e9   :  { %1539 = vmatmul.mubr.f32.vlgmr.msra.gmra.mrb[4].mxu1 %v501_v46  ;;  %1643 = vmatprep.mubr.msk.f32.mxu0 %vm2128_vm0, %v2129_v1  ;;  %v838_v46 = vld [vmem:[#allocation2 + $0x3b0] sm:$0xff]  ;;  %v1998_v50 = vpack.c.bf16 %v853_v44, %v852_v43  ;;  %v1024_v44 = vld [vmem:[#allocation2 + $0x4d8] sm:$0xff] }
 0x1ea   :  { %1608 = vmatprep.mubr.msk.f32.mxu1 %vm2128_vm0, %v2129_v1  ;;  %1969 = vmatpush3.bf16.msra.mxu0 %v1944_v51  ;;  %v2025_v53 = vpack.c.bf16 %v839_v49, %v838_v46 }
 0x1eb   :  { %1945 = vmatpush3.bf16.msra.mxu1 %v1944_v51  ;;  %1970 = vmatprep.subr.bf16.mxu0 %v2127_v0  ;;  %v854_v51 = vld [vmem:[#allocation2 + $0x430] sm:$0xff] }
 0x1ec   :  { %1946 = vmatprep.subr.bf16.mxu1 %v2127_v0  ;;  %v2001_v56 = vpack.c.bf16 %v855_v52, %v854_v51  ;;  %v1026_v51 = vld [vmem:[#allocation2 + $0x4e8] sm:$0xff] }
 0x1ee   :  { %1972 = vmatpush3.bf16.msra.mxu0 %v1947_v54 }
 0x1ef   :  { %1948 = vmatpush3.bf16.msra.mxu1 %v1947_v54  ;;  %1973 = vmatprep.subr.bf16.mxu0 %v2127_v0  ;;  %v840_v54 = vld [vmem:[#allocation2 + $0x3c0] sm:$0xff] }
 0x1f0   :  { %1949 = vmatprep.subr.bf16.mxu1 %v2127_v0  ;;  %v2028_v60 = vpack.c.bf16 %v841_v55, %v840_v54  ;;  %v1028_v54 = vld [vmem:[#allocation2 + $0x4f8] sm:$0xff] }
 0x1f2   :  { %1975 = vmatpush3.bf16.msra.mxu0 %v1950_v57 }
 0x1f3   :  { %1951 = vmatpush3.bf16.msra.mxu1 %v1950_v57  ;;  %1976 = vmatprep.subr.bf16.mxu0 %v2127_v0  ;;  %v856_v57 = vld [vmem:[#allocation2 + $0x440] sm:$0xff] }
 0x1f4   :  { %1952 = vmatprep.subr.bf16.mxu1 %v2127_v0  ;;  %v2004_v63 = vpack.c.bf16 %v857_v58, %v856_v57  ;;  %v1122_v57 = vld [vmem:[#allocation2 + $0x520] ss:$0 sm:$0xff] }
 0x1f6   :  { %1978 = vmatpush3.bf16.msra.mxu0 %v1953_v61 }
 0x1f7   :  { %1954 = vmatpush3.bf16.msra.mxu1 %v1953_v61  ;;  %1979 = vmatprep.subr.bf16.mxu0 %v2127_v0  ;;  %v842_v61 = vld [vmem:[#allocation2 + $0x3d0] sm:$0xff] }
 0x1f8   :  { %1955 = vmatprep.subr.bf16.mxu1 %v2127_v0  ;;  %v2031_v4 = vpack.c.bf16 %v843_v62, %v842_v61 }
 0x1fa   :  { %1981 = vmatpush3.bf16.msra.mxu0 %v1956_v2 }
 0x1fb   :  { %1957 = vmatpush3.bf16.msra.mxu1 %v1956_v2  ;;  %1982 = vmatprep.subr.bf16.mxu0 %v2127_v0  ;;  %v858_v2 = vld [vmem:[#allocation2 + $0x450] sm:$0xff] }
 0x1fc   :  { %1958 = vmatprep.subr.bf16.mxu1 %v2127_v0  ;;  %v2007_v7 = vpack.c.bf16 %v859_v3, %v858_v2  ;;  %v1123_v2 = vld [vmem:[#allocation2 + $0x528] ss:$0 sm:$0xff] }
 0x1fe   :  { %1984 = vmatpush3.bf16.msra.mxu0 %v1959_v5 }
 0x1ff   :  { %1960 = vmatpush3.bf16.msra.mxu1 %v1959_v5  ;;  %1985 = vmatprep.subr.bf16.mxu0 %v2127_v0  ;;  %v844_v5 = vld [vmem:[#allocation2 + $0x3e0] sm:$0xff] }
 0x200   :  { %1961 = vmatprep.subr.bf16.mxu1 %v2127_v0  ;;  %v2034_v10 = vpack.c.bf16 %v845_v6, %v844_v5 }
 0x202   :  { %1987 = vmatpush3.bf16.msra.mxu0 %v1962_v8 }
 0x203   :  { %v2224_v47 = vpop.f32.mrb[4].mxu0  ;;  %1963 = vmatpush3.bf16.msra.mxu1 %v1962_v8  ;;  %1988 = vmatprep.subr.bf16.mxu0 %v2127_v0  ;;  %v860_v8 = vld [vmem:[#allocation2 + $0x460] sm:$0xff] }
 0x204   :  { %v2226_v48 = vpop.f32.mrb[5].mxu0  ;;  %1964 = vmatprep.subr.bf16.mxu1 %v2127_v0 }
 0x206   :  { %1990 = vmatpush3.bf16.msra.mxu0 %v1965_v11 }
 0x207   :  { %1966 = vmatpush3.bf16.msra.mxu1 %v1965_v11  ;;  %2015 = vmatprep.subr.bf16.mxu0 %v2127_v0  ;;  %v846_v11 = vld [vmem:[#allocation2 + $0x3f0] sm:$0xff] }
 0x208   :  { %1991 = vmatprep.subr.bf16.mxu1 %v2127_v0 }
 0x2bb   :  { %v656_v12 = vpop.f32.mrb[6].mxu0 }
 0x2bc   :  { %v660_v13 = vmul.f32 0.35355338, %v656_v12  ;;  %v584_v14 = vpop.f32.mrb[4].mxu1  ;;  %v1575_v15 = vpop.f32.mrb[7].mxu0  ;;  %v847_v12 = vld [vmem:[#allocation2 + $0x3f8] sm:$0xff] }
 0x2bd   :  { %v588_v16 = vmul.f32 0.35355338, %v584_v14  ;;  %v1540_v17 = vpop.f32.mrb[5].mxu1  ;;  %v2037_v14 = vpack.c.bf16 %v847_v12, %v846_v11  ;;  %v862_v15 = vld [vmem:[#allocation2 + $0x470] sm:$0xff] }
 0x2bf   :  { %v661_v18 = vmax.f32 %v588_v16, %v660_v13 }
 0x2c1   :  { %v662_v19 = vsub.f32 %v588_v16, %v661_v18  ;;  %v665_v20 = vsub.f32 %v660_v13, %v661_v18  ;;  %v2010_v13 = vpack.c.bf16 %v861_v9, %v860_v8  ;;  %v863_v16 = vld [vmem:[#allocation2 + $0x478] sm:$0xff] }
 0x2c2   :  { %v2013_v17 = vpack.c.bf16 %v863_v16, %v862_v15  ;;  %v1121_v18 = vld [vmem:[#allocation2 + $0x518] ss:$0 sm:$0xff] }
 0x2c3   :  { %v663_v21 = vmul.f32 1.442695, %v662_v19  ;;  %v666_v22 = vmul.f32 1.442695, %v665_v20  ;;  %v492_v19 = vadd.f32 %v2224_v47, %v1121_v18  ;;  %v487_v20 = vadd.f32 %v1121_v18, %v2226_v48  ;;  %v1016_v47 = vld [vmem:[#allocation2 + $0x498] sm:$0xff] }
 0x2c4   :  { %v2043_v48 = vpack.c.bf16 %v1016_v47, %v1015_v34 }
 0x2c5   :  { %2070 = vpow2.f32 %v663_v21  ;;  %v498_v21 = vmul.f32 0.01, %v492_v19  ;;  %vm495_vm4 = vcmp.gt.f32.partialorder %v487_v20, 0.0  ;;  %vm496_vm5 = vcmp.gt.f32.partialorder %v492_v19, 0.0 }
 0x2c6   :  { %2072 = vpow2.f32 %v666_v22  ;;  %v497_v22 = vmul.f32 0.01, %v487_v20 }
 0x2cf   :  { %v2071_v23 = vpop.eup %2070 }
 0x2d0   :  { %v2073_v24 = vpop.eup %2072 }
 0x2d1   :  { %v668_v25 = vadd.f32 %v2073_v24, %v2071_v23 }
 0x2d3   :  { %2074 = vrcp.f32 %v668_v25  ;;  %v499_v25 = vsel %vm495_vm4, %v487_v20, %v497_v22 }
 0x2dd   :  { %v2075_v30 = vpop.eup %2074 }
 0x2de   :  { %v671_v32 = vmul.f32 %v2075_v30, %v2071_v23  ;;  %v758_v33 = vmul.f32 %v2075_v30, %v2073_v24  ;;  %v1013_v23 = vld [vmem:[#allocation2 + $0x480] sm:$0xff]  ;;  %v1014_v24 = vld [vmem:[#allocation2 + $0x488] sm:$0xff] }
 0x2e0   :  { %1609 = vmatmul.mubr.f32.vlgmr.msra.gmra.mrb[6].mxu1 %v671_v32  ;;  %1644 = vmatmul.mubr.f32.vlgmr.msra.gmra.mrb[8].mxu0 %v758_v33  ;;  %v2040_v32 = vpack.c.bf16 %v1014_v24, %v1013_v23 }
 0x2e1   :  { %2017 = vmatpush3.bf16.msra.mxu0 %v2016_v31  ;;  %1713 = vmatprep.mubr.msk.f32.mxu0 %vm2128_vm0, %v2129_v1 }
 0x2e2   :  { %2018 = vmatprep.subr.bf16.mxu0 %v2127_v0  ;;  %1993 = vmatpush3.bf16.msra.mxu1 %v1992_v36  ;;  %v1018_v36 = vld [vmem:[#allocation2 + $0x4a8] sm:$0xff] }
 0x2e3   :  { %1994 = vmatprep.subr.bf16.mxu1 %v2127_v0  ;;  %1678 = vmatprep.mubr.msk.f32.mxu1 %vm2128_vm0, %v2129_v1  ;;  %v2046_v37 = vpack.c.bf16 %v1018_v36, %v1017_v35 }
 0x2e5   :  { %2020 = vmatpush3.bf16.msra.mxu0 %v2019_v39  ;;  %v1020_v39 = vld [vmem:[#allocation2 + $0x4b8] sm:$0xff] }
 0x2e6   :  { %2021 = vmatprep.subr.bf16.mxu0 %v2127_v0  ;;  %1996 = vmatpush3.bf16.msra.mxu1 %v1995_v42  ;;  %v2049_v40 = vpack.c.bf16 %v1020_v39, %v1019_v38  ;;  %v1022_v42 = vld [vmem:[#allocation2 + $0x4c8] sm:$0xff] }
 0x2e7   :  { %1997 = vmatprep.subr.bf16.mxu1 %v2127_v0  ;;  %v2052_v43 = vpack.c.bf16 %v1022_v42, %v1021_v41 }
 0x2e9   :  { %2023 = vmatpush3.bf16.msra.mxu0 %v2022_v45 }
 0x2ea   :  { %2024 = vmatprep.subr.bf16.mxu0 %v2127_v0  ;;  %1999 = vmatpush3.bf16.msra.mxu1 %v1998_v50  ;;  %v1025_v50 = vld [vmem:[#allocation2 + $0x4e0] sm:$0xff] }
 0x2eb   :  { %2000 = vmatprep.subr.bf16.mxu1 %v2127_v0  ;;  %v2058_v52 = vpack.c.bf16 %v1026_v51, %v1025_v50 }
 0x2ed   :  { %2026 = vmatpush3.bf16.msra.mxu0 %v2025_v53  ;;  %v1027_v53 = vld [vmem:[#allocation2 + $0x4f0] sm:$0xff] }
 0x2ee   :  { %2027 = vmatprep.subr.bf16.mxu0 %v2127_v0  ;;  %2002 = vmatpush3.bf16.msra.mxu1 %v2001_v56  ;;  %v2061_v55 = vpack.c.bf16 %v1028_v54, %v1027_v53 }
 0x2ef   :  { %2003 = vmatprep.subr.bf16.mxu1 %v2127_v0 }
 0x2f1   :  { %2029 = vmatpush3.bf16.msra.mxu0 %v2028_v60 }
 0x2f2   :  { %2030 = vmatprep.subr.bf16.mxu0 %v2127_v0  ;;  %2005 = vmatpush3.bf16.msra.mxu1 %v2004_v63 }
 0x2f3   :  { %2006 = vmatprep.subr.bf16.mxu1 %v2127_v0 }
 0x2f5   :  { %2032 = vmatpush3.bf16.msra.mxu0 %v2031_v4 }
 0x2f6   :  { %2033 = vmatprep.subr.bf16.mxu0 %v2127_v0  ;;  %2008 = vmatpush3.bf16.msra.mxu1 %v2007_v7 }
 0x2f7   :  { %2009 = vmatprep.subr.bf16.mxu1 %v2127_v0 }
 0x2f9   :  { %2035 = vmatpush3.bf16.msra.mxu0 %v2034_v10 }
 0x2fa   :  { %2036 = vmatprep.subr.bf16.mxu0 %v2127_v0  ;;  %2011 = vmatpush3.bf16.msra.mxu1 %v2010_v13 }
 0x2fb   :  { %2012 = vmatprep.subr.bf16.mxu1 %v2127_v0 }
 0x2fd   :  { %2038 = vmatpush3.bf16.msra.mxu0 %v2037_v14 }
 0x2fe   :  { %2014 = vmatpush3.bf16.msra.mxu1 %v2013_v17 }
 0x2ff   :  { %2039 = vmatprep.subr.bf16.mxu1 %v2127_v0 }
 0x300   :  { %1714 = vmatmul.mubr.f32.vlgmr.msra.gmra.mrb[10].mxu0 %v2188_v59  ;;  %v500_v59 = vsel %vm496_vm5, %v492_v19, %v498_v21 }
 0x3b3   :  { %v754_v26 = vpop.f32.mrb[6].mxu1  ;;  %v825_v27 = vpop.f32.mrb[8].mxu0 }
 0x3b4   :  { %v829_v28 = vmul.f32 %v754_v26, %v499_v25  ;;  %v830_v29 = vmul.f32 %v825_v27, %v500_v59  ;;  %v1610_v30 = vpop.f32.mrb[7].mxu1  ;;  %v1645_v31 = vpop.f32.mrb[9].mxu0 }
 0x3b6   :  { %v831_v33 = vadd.f32 %v830_v29, %v829_v28 }
 0x3b8   :  { %1679 = vmatmul.mubr.f32.vlgmr.msra.gmra.mrb[8].mxu1 %v831_v33 }
 0x3b9   :  { %2041 = vmatpush3.bf16.msra.mxu1 %v2040_v32  ;;  %1748 = vmatprep.mubr.msk.f32.mxu1 %vm2128_vm0, %v2129_v1  ;;  %v1023_v1 = vld [vmem:[#allocation2 + $0x4d0] sm:$0xff] }
 0x3ba   :  { %2042 = vmatprep.subr.bf16.mxu1 %v2127_v0  ;;  %v2055_v45 = vpack.c.bf16 %v1024_v44, %v1023_v1 }
 0x3bd   :  { %2044 = vmatpush3.bf16.msra.mxu1 %v2043_v48 }
 0x3be   :  { %2045 = vmatprep.subr.bf16.mxu1 %v2127_v0 }
 0x3c1   :  { %2047 = vmatpush3.bf16.msra.mxu1 %v2046_v37 }
 0x3c2   :  { %2048 = vmatprep.subr.bf16.mxu1 %v2127_v0 }
 0x3c5   :  { %2050 = vmatpush3.bf16.msra.mxu1 %v2049_v40 }
 0x3c6   :  { %2051 = vmatprep.subr.bf16.mxu1 %v2127_v0 }
 0x3c9   :  { %2053 = vmatpush3.bf16.msra.mxu1 %v2052_v43 }
 0x3ca   :  { %2054 = vmatprep.subr.bf16.mxu1 %v2127_v0 }
 0x3cd   :  { %2056 = vmatpush3.bf16.msra.mxu1 %v2055_v45 }
 0x3ce   :  { %2057 = vmatprep.subr.bf16.mxu1 %v2127_v0 }
 0x3d1   :  { %2059 = vmatpush3.bf16.msra.mxu1 %v2058_v52 }
 0x3d2   :  { %2060 = vmatprep.subr.bf16.mxu1 %v2127_v0 }
 0x3d3   :  { %v1000_v46 = vpop.f32.mrb[10].mxu0 }
 0x3d4   :  { %v1715_v49 = vpop.f32.mrb[11].mxu0 }
 0x3d5   :  { %2062 = vmatpush3.bf16.msra.mxu1 %v2061_v55 }
 0x48b   :  { %v930_v56 = vpop.f32.mrb[8].mxu1 }
 0x48c   :  { %v1001_v58 = vadd.f32 %v1000_v46, %v930_v56  ;;  %v1680_v60 = vpop.f32.mrb[9].mxu1 }
 0x48e   :  { %v1009_v61 = vadd.f32 %v1122_v57, %v1001_v58 }
 0x490   :  { %v1011_v62 = vmul.f32 0.01, %v1009_v61  ;;  %vm1010_vm6 = vcmp.gt.f32.partialorder %v1009_v61, 0.0 }
 0x492   :  { %v1012_v63 = vsel %vm1010_vm6, %v1009_v61, %v1011_v62 }
 0x493   :  { %1749 = vmatmul.mubr.f32.vlgmr.msra.gmra.mrb[10].mxu1 %v1012_v63 }
 0x566   :  { %v1100_v3 = vpop.f32.mrb[10].mxu1 }
 0x567   :  { %v1101_v4 = vadd.f32 %v1123_v2, %v1100_v3  ;;  %v1750_v5 = vpop.f32.mrb[11].mxu1 }
 0x569   :  { %1104 = vst [vmem:[#allocation5] sm:$0xff] %v1101_v4 }
 0x56a   :  { %2109 = shalt.err (!%p2106_p12)
}
 0x56b   :  { %s2110_s4 = scalar_lea.hbm %s2289_s2, 128 }
 0x56c   :  { %p2111_p13 = scmp.ne.s32.totalorder %s2289_s2, %s2110_s4  ;;  %p2114_p0 = scmp.lt.u32.totalorder %s2110_s4, %s2289_s2 }
 0x56e   :  { %p2116_p1 = pnand %p2114_p0, %p2111_p13 }
 0x570   :  { %2119 = shalt.err (!%p2116_p1)
}
 0x571   :  { %1114 = dma.vmem_to_hbm [thread:$0]  %s1112_s28, 128, %s2289_s2, [#allocation4]  }
 0x572   :  { %2122 = dma.done.wait [#allocation4], 128  }
 0x573   :  { %2123 = vsyncadd [#allocation4], 4294967168 }
 0x574   :  { %1118 = vsyncpa [#allocation3], 1 }
 0x575   :  { %1119 = vsyncpa [#allocation4], 1 }

</bundles_post_ra>
